<compile_context>
chip_gen: v7x
topology: tpu7x:2x2x1
jax: 0.10.0
libtpu: 0.0.40
codegen_flags: <defaults>
</compile_context>

<pallas_src>
import functools

import jax
import jax.numpy as jnp
from jax.experimental import pallas as pl
from jax.experimental.pallas import tpu as pltpu


# ---------------------------------------------------------------------------
# Tiled dense linear layer:  y = x @ W_t + b,   W_t is (in, out)
# ---------------------------------------------------------------------------
def _linear_kernel(x_ref, w_ref, b_ref, o_ref, acc_ref):
    kk = pl.program_id(2)

    @pl.when(kk == 0)
    def _():
        acc_ref[...] = jnp.zeros_like(acc_ref)

    acc_ref[...] += jnp.dot(x_ref[...], w_ref[...],
                            preferred_element_type=jnp.float32)

    @pl.when(kk == pl.num_programs(2) - 1)
    def _():
        # Bias added once, in the finalize step only.
        o_ref[...] = (acc_ref[...] + b_ref[...]).astype(o_ref.dtype)


def _pick_tile(dim, target, align):
    """Largest align-multiple tile <= target that divides dim (or full dim)."""
    if dim <= target:
        return dim
    t = (target // align) * align
    while t >= align:
        if dim % t == 0:
            return t
        t -= align
    return dim


def linear(x2d, w_t, b, *, tm=256, tn=256, tk=512):
    M, K = x2d.shape
    N = w_t.shape[1]
    tm = _pick_tile(M, tm, 8)
    tn = _pick_tile(N, tn, 128)
    tk = _pick_tile(K, tk, 128)
    grid = (M // tm, N // tn, K // tk)
    return pl.pallas_call(
        _linear_kernel,
        out_shape=jax.ShapeDtypeStruct((M, N), jnp.float32),
        grid=grid,
        in_specs=[
            pl.BlockSpec((tm, tk), lambda i, j, k: (i, k)),
            pl.BlockSpec((tk, tn), lambda i, j, k: (k, j)),
            pl.BlockSpec((1, tn), lambda i, j, k: (0, j)),
        ],
        out_specs=pl.BlockSpec((tm, tn), lambda i, j, k: (i, j)),
        scratch_shapes=[pltpu.VMEM((tm, tn), jnp.float32)],
        compiler_params=pltpu.CompilerParams(
            dimension_semantics=("parallel", "parallel", "arbitrary"),
            vmem_limit_bytes=32 * 1024 * 1024,
        ),
    )(x2d, w_t, b.reshape(1, N))


# ---------------------------------------------------------------------------
# Fused attention + output projection.
# Grid over heads; each step handles the full batch:
#   score_h = Q_h K_h^T (batched, contracting last dims), heatmap store,
#   optional causal mask, softmax (reciprocal+mul), wv_h = p V_h,
#   out += wv_h @ W_out_h   (out block resident across the head axis).
# ---------------------------------------------------------------------------
def _attn_kernel(q_ref, k_ref, v_ref, wo_ref, bo_ref, heat_ref, out_ref, *,
                 causal):
    i = pl.program_id(0)

    qb = q_ref[...]                    # (B, T, dq)
    kb = k_ref[...]                    # (B, T, dq)
    vb = v_ref[...]                    # (B, T, dv)

    # Q K^T contracting the last dims directly — no explicit transpose.
    score = jnp.einsum('bqd,bkd->bqk', qb, kb,
                       preferred_element_type=jnp.float32)      # (B, T, T)
    heat_ref[...] = score              # heatmap = pre-mask, pre-softmax scores

    if causal:                         # stage == 'train'
        row = jax.lax.broadcasted_iota(jnp.int32, score.shape, 1)
        col = jax.lax.broadcasted_iota(jnp.int32, score.shape, 2)
        score = jnp.where(col <= row, score, jnp.float32(-2 ** 32 + 1))

    # Softmax in f32; one reciprocal then multiply (no per-element divide).
    m = jnp.max(score, axis=-1, keepdims=True)
    e = jnp.exp(score - m)
    denom = jnp.sum(e, axis=-1, keepdims=True)
    p = e * pl.reciprocal(denom, approx=False)

    wv = jnp.einsum('bqk,bkd->bqd', p, vb,
                    preferred_element_type=jnp.float32)          # (B, T, dv)

    # Fused W_out: this head's contribution to the lane-dense output slab.
    contrib = jnp.einsum('btd,de->bte', wv, wo_ref[...],
                         preferred_element_type=jnp.float32)     # (B,T,d_model)

    @pl.when(i == 0)
    def _():
        out_ref[...] = jnp.zeros_like(out_ref) + bo_ref[...]

    out_ref[...] = out_ref[...] + contrib


def attention_out(qh, kh, vh, wo_h, bo, causal):
    # qh, kh: (h, B, T, dq); vh: (h, B, T, dv); wo_h: (h, dv, d_model)
    h, B, T, dq = qh.shape
    dv = vh.shape[-1]
    d_model = wo_h.shape[-1]
    kern = functools.partial(_attn_kernel, causal=causal)
    # TODO(synk): for large T, tile the KV axis flash-style (running max/sum
    # in VMEM scratch, heat tile streamed per kv step) so the (T, T) score
    # block does not have to fit in VMEM.
    heat, out = pl.pallas_call(
        kern,
        out_shape=(
            jax.ShapeDtypeStruct((h, B, T, T), jnp.float32),
            jax.ShapeDtypeStruct((B, T, d_model), jnp.float32),
        ),
        grid=(h,),
        in_specs=[
            pl.BlockSpec((None, B, T, dq), lambda i: (i, 0, 0, 0)),
            pl.BlockSpec((None, B, T, dq), lambda i: (i, 0, 0, 0)),
            pl.BlockSpec((None, B, T, dv), lambda i: (i, 0, 0, 0)),
            pl.BlockSpec((None, dv, d_model), lambda i: (i, 0, 0)),
            pl.BlockSpec((1, 1, d_model), lambda i: (0, 0, 0)),
        ],
        out_specs=(
            pl.BlockSpec((None, B, T, T), lambda i: (i, 0, 0, 0)),
            pl.BlockSpec((B, T, d_model), lambda i: (0, 0, 0)),
        ),
        compiler_params=pltpu.CompilerParams(
            # Head axis is a reduction axis for the fused output projection.
            dimension_semantics=("arbitrary",),
            vmem_limit_bytes=32 * 1024 * 1024,
        ),
    )(qh, kh, vh, wo_h, bo)
    return heat, out


# ---------------------------------------------------------------------------
# Module-equivalent wrapper
# ---------------------------------------------------------------------------
def multi_head_attention(x, params, stage, *, q, v, h):
    """x: (B, T, d_model). Returns (out (B,T,d_model), heatmap (h*B, T, T))."""
    B, T, d_model = x.shape
    x2d = x.reshape(B * T, d_model)

    # Fused Q/K/V projection: single tiled GEMM over concatenated weights.
    w_qkv = jnp.concatenate(
        [params["wq_t"], params["wk_t"], params["wv_t"]], axis=1)
    b_qkv = jnp.concatenate([params["bq"], params["bk"], params["bv"]], axis=0)
    qkv = linear(x2d, w_qkv, b_qkv)              # (B*T, h*q + h*q + h*v)

    nq = q * h
    nv = v * h
    Qp = qkv[:, :nq].reshape(B, T, h, q)
    Kp = qkv[:, nq:2 * nq].reshape(B, T, h, q)
    Vp = qkv[:, 2 * nq:2 * nq + nv].reshape(B, T, h, v)

    # Head-major stacking (matches torch.cat(chunk(., h, dim=-1), dim=0)).
    qh = jnp.transpose(Qp, (2, 0, 1, 3))         # (h, B, T, q)
    kh = jnp.transpose(Kp, (2, 0, 1, 3))
    vh = jnp.transpose(Vp, (2, 0, 1, 3))

    # Per-head slices of W_out for the fused output projection.
    wo_h = params["wo_t"].reshape(h, v, d_model)
    bo = params["bo"].reshape(1, 1, d_model)

    causal = (stage == "train")
    heat, out = attention_out(qh, kh, vh, wo_h, bo, causal)

    # heatmap_score: (h*B, T, T), head-major (torch.cat along dim 0).
    heatmap = heat.reshape(h * B, T, T)
    return out, heatmap


# ---------------------------------------------------------------------------
# Pure-JAX reference (correctness sanity check)
# ---------------------------------------------------------------------------
def reference(x, params, stage, *, q, v, h):
    B, T, d_model = x.shape
    lin = lambda z, w, b: z @ w + b
    Qp = lin(x, params["wq_t"], params["bq"])
    Kp = lin(x, params["wk_t"], params["bk"])
    Vp = lin(x, params["wv_t"], params["bv"])
    split = lambda z, d: jnp.concatenate(
        [z[..., i * d:(i + 1) * d] for i in range(h)], axis=0)
    Q, K, V = split(Qp, q), split(Kp, q), split(Vp, v)
    score = jnp.einsum("btd,bsd->bts", Q, K)
    heat = score
    if stage == "train":
        mask = jnp.tril(jnp.ones((T, T)))
        score = jnp.where(mask > 0, score, jnp.float32(-2 ** 32 + 1))
    score = jax.nn.softmax(score, axis=-1)
    wv = jnp.einsum("bts,bsv->btv", score, V)
    weight_V = jnp.concatenate(jnp.split(wv, h, axis=0), axis=-1)
    out = lin(weight_V, params["wo_t"], params["bo"])
    return out, heat


# ---------------------------------------------------------------------------
if __name__ == "__main__":
    B, T = 2, 8
    d_model, q, v, h = 32, 8, 8, 4

    key = jax.random.PRNGKey(0)
    ks = jax.random.split(key, 9)
    scale = 0.1
    params = {
        "wq_t": scale * jax.random.normal(ks[0], (d_model, q * h), jnp.float32),
        "bq":   scale * jax.random.normal(ks[1], (q * h,), jnp.float32),
        "wk_t": scale * jax.random.normal(ks[2], (d_model, q * h), jnp.float32),
        "bk":   scale * jax.random.normal(ks[3], (q * h,), jnp.float32),
        "wv_t": scale * jax.random.normal(ks[4], (d_model, v * h), jnp.float32),
        "bv":   scale * jax.random.normal(ks[5], (v * h,), jnp.float32),
        "wo_t": scale * jax.random.normal(ks[6], (v * h, d_model), jnp.float32),
        "bo":   scale * jax.random.normal(ks[7], (d_model,), jnp.float32),
    }
    x = jax.random.normal(ks[8], (B, T, d_model), jnp.float32)

    for stage in ("train", "test"):
        out, heatmap = multi_head_attention(x, params, stage, q=q, v=v, h=h)
        out = jax.block_until_ready(out)
        heatmap = jax.block_until_ready(heatmap)

        ref_out, ref_heat = reference(x, params, stage, q=q, v=v, h=h)
        assert out.shape == (B, T, d_model)
        assert heatmap.shape == (h * B, T, T)
        assert jnp.allclose(out, ref_out, atol=2e-4, rtol=2e-4), stage
        assert jnp.allclose(heatmap, ref_heat, atol=2e-4, rtol=2e-4), stage

    print("KERNEL_OK")
</pallas_src>

<mosaic_0001>
module attributes {stable_mosaic.version = 11 : i64} {
  func.func @_linear_kernel(%arg0: i32, %arg1: i32, %arg2: i32, %arg3: memref<16x32xf32, #tpu.memory_space<vmem>>, %arg4: memref<32x96xf32, #tpu.memory_space<vmem>>, %arg5: memref<1x96xf32, #tpu.memory_space<vmem>>, %arg6: memref<16x96xf32, #tpu.memory_space<vmem>>, %arg7: memref<16x96xf32, #tpu.memory_space<vmem>>) attributes {dimension_semantics = [#tpu.dimension_semantics<parallel>, #tpu.dimension_semantics<parallel>, #tpu.dimension_semantics<arbitrary>], iteration_bounds = array<i64: 1, 1, 1>, scalar_prefetch = 0 : i64, scratch_operands = 1 : i64, tpu.core_type = #tpu.core_type<tc>, window_params = [{transform_indices = @transform_0, window_bounds = array<i64: 16, 32>}, {transform_indices = @transform_1, window_bounds = array<i64: 32, 96>}, {transform_indices = @transform_2, window_bounds = array<i64: 1, 96>}, {transform_indices = @transform_3, window_bounds = array<i64: 16, 96>}]} {
    %c0_i32 = arith.constant 0 : i32
    %0 = arith.cmpi eq, %arg2, %c0_i32 : i32
    %1 = arith.extui %0 : i1 to i32
    %c0_i32_0 = arith.constant 0 : i32
    %2 = arith.cmpi ne, %1, %c0_i32_0 : i32
    scf.if %2 {
      %cst_10 = arith.constant 0.000000e+00 : f32
      %12 = vector.broadcast %cst_10 : f32 to vector<16x96xf32>
      %c0_11 = arith.constant 0 : index
      %c0_12 = arith.constant 0 : index
      %13 = vector.load %arg7[%c0_11, %c0_12] : memref<16x96xf32, #tpu.memory_space<vmem>>, vector<16x96xf32>
      tpu.vector_store %arg7[%c0_11, %c0_12], %12 {strides = array<i32>} : memref<16x96xf32, #tpu.memory_space<vmem>>, vector<16x96xf32>,
    } else {
    }
    %c0 = arith.constant 0 : index
    %c0_1 = arith.constant 0 : index
    %3 = vector.load %arg7[%c0, %c0_1] : memref<16x96xf32, #tpu.memory_space<vmem>>, vector<16x96xf32>
    %c0_2 = arith.constant 0 : index
    %c0_3 = arith.constant 0 : index
    %4 = vector.load %arg3[%c0_2, %c0_3] : memref<16x32xf32, #tpu.memory_space<vmem>>, vector<16x32xf32>
    %c0_4 = arith.constant 0 : index
    %c0_5 = arith.constant 0 : index
    %5 = vector.load %arg4[%c0_4, %c0_5] : memref<32x96xf32, #tpu.memory_space<vmem>>, vector<32x96xf32>
    %cst = arith.constant dense<0.000000e+00> : vector<16x96xf32>
    %6 = tpu.matmul %4, %5, %cst {dimension_numbers = #tpu.dot_dimension_numbers<[1], [0], [0], [1], [0, 0, 1, 1], [], []>} : vector<16x32xf32>, vector<32x96xf32>, vector<16x96xf32> -> vector<16x96xf32>
    %7 = arith.addf %3, %6 : vector<16x96xf32>
    %c0_6 = arith.constant 0 : index
    %c0_7 = arith.constant 0 : index
    %8 = vector.load %arg7[%c0_6, %c0_7] : memref<16x96xf32, #tpu.memory_space<vmem>>, vector<16x96xf32>
    tpu.vector_store %arg7[%c0_6, %c0_7], %7 {strides = array<i32>} : memref<16x96xf32, #tpu.memory_space<vmem>>, vector<16x96xf32>,
    %c0_i32_8 = arith.constant 0 : i32
    %9 = arith.cmpi eq, %arg2, %c0_i32_8 : i32
    %10 = arith.extui %9 : i1 to i32
    %c0_i32_9 = arith.constant 0 : i32
    %11 = arith.cmpi ne, %10, %c0_i32_9 : i32
    scf.if %11 {
      %c0_10 = arith.constant 0 : index
      %c0_11 = arith.constant 0 : index
      %12 = vector.load %arg7[%c0_10, %c0_11] : memref<16x96xf32, #tpu.memory_space<vmem>>, vector<16x96xf32>
      %c0_12 = arith.constant 0 : index
      %c0_13 = arith.constant 0 : index
      %13 = vector.load %arg5[%c0_12, %c0_13] : memref<1x96xf32, #tpu.memory_space<vmem>>, vector<1x96xf32>
      %14 = vector.broadcast %13 : vector<1x96xf32> to vector<16x96xf32>
      %15 = arith.addf %12, %14 : vector<16x96xf32>
      %c0_14 = arith.constant 0 : index
      %c0_15 = arith.constant 0 : index
      %16 = vector.load %arg6[%c0_14, %c0_15] : memref<16x96xf32, #tpu.memory_space<vmem>>, vector<16x96xf32>
      tpu.vector_store %arg6[%c0_14, %c0_15], %15 {strides = array<i32>} : memref<16x96xf32, #tpu.memory_space<vmem>>, vector<16x96xf32>,
    } else {
    }
    return
  }
  func.func @transform_0(%arg0: i32, %arg1: i32, %arg2: i32) -> (i32, i32) {
    %c0_i32 = arith.constant 0 : i32
    return %arg0, %arg2 : i32, i32
  }
  func.func @transform_1(%arg0: i32, %arg1: i32, %arg2: i32) -> (i32, i32) {
    %c0_i32 = arith.constant 0 : i32
    return %arg2, %arg1 : i32, i32
  }
  func.func @transform_2(%arg0: i32, %arg1: i32, %arg2: i32) -> (i32, i32) {
    %c0_i32 = arith.constant 0 : i32
    %c0_i32_0 = arith.constant 0 : i32
    return %c0_i32, %arg1 : i32, i32
  }
  func.func @transform_3(%arg0: i32, %arg1: i32, %arg2: i32) -> (i32, i32) {
    %c0_i32 = arith.constant 0 : i32
    return %arg0, %arg1 : i32, i32
  }
}

</mosaic_0001>

<bundles_post_ra>
// kernel: tpu_custom_call.1
= control target key start
LH: loop header
LB: loop body
LE: loop exit
PB: predicated region body
PF: predicated region fallthrough
CT: control target
= control target key end

     0   :  { %8 = vsyncpa [#allocation4], 0  ;;  %s365_s0 = inlined_call_operand.hbm [shape: f32[16,32], index: 0, kind: input, shape index: {}]   ;;  %s366_s1 = inlined_call_operand.hbm [shape: f32[32,96], index: 1, kind: input, shape index: {}]   ;;  %s367_s2 = inlined_call_operand.vmem [shape: f32[1,96], index: 2, kind: input, shape index: {}]   ;;  %s368_s3 = inlined_call_operand.hbm [shape: f32[16,96], index: 3, kind: output, shape index: {}]  }
   0x1   :  { %9 = vsyncpa [#allocation7], 0 }
   0x2   :  { %10 = vsyncpa [#allocation5], 0  ;;  %s285_s12 = smov [#allocation3]   ;;  %s213_s16 = scalar_lea.hbm %s365_s0, 256 }
   0x3   :  { %s16_s13 = sshll.u32 %s285_s12, 4  ;;  %p214_p0 = scmp.ne.s32.totalorder %s365_s0, %s213_s16  ;;  %s17_s13 = int_to_ptr.vmem [resolvable:$true] %s16_s13 }
   0x4   :  { %p217_p1 = scmp.lt.u32.totalorder %s213_s16, %s365_s0 }
   0x6   :  { %p219_p2 = pnand %p217_p1, %p214_p0 }
   0x8   :  { %222 = shalt.err (!%p219_p2)
}
   0x9   :  { %s223_s21 = scalar_lea.vmem %s17_s13, 256  ;;  %p228_p4 = scmp.lt.s32.totalorder %s17_s13, %s17_s13 }
   0xa   :  { %p224_p3 = scmp.ne.s32.totalorder %s17_s13, %s223_s21  ;;  %p229_p5 = scmp.lt.s32.totalorder %s223_s21, %s223_s21 }
   0xc   :  { %p230_p6 = por %p229_p5, %p228_p4 }
   0xe   :  { %p231_p7 = pnand %p230_p6, %p224_p3 }
  0x10   :  { %234 = shalt.err (!%p231_p7)
}
  0x11   :  { %s286_s22 = smov 128   ;;  %s287_s23 = smov 8  }
  0x12   :  { %22 = dma.hbm_to_vmem [thread:$0]  %s365_s0, 256, %s17_s13, [#allocation4], %s286_s22, %s286_s22, %s287_s23  }
  0x13   :  { %s288_s26 = smov [#allocation6]   ;;  %s235_s30 = scalar_lea.hbm %s366_s1, 512 }
  0x14   :  { %s28_s27 = sshll.u32 %s288_s26, 4  ;;  %p236_p8 = scmp.ne.s32.totalorder %s366_s1, %s235_s30  ;;  %s29_s27 = int_to_ptr.vmem [resolvable:$true] %s28_s27 }
  0x15   :  { %p239_p9 = scmp.lt.u32.totalorder %s235_s30, %s366_s1 }
  0x17   :  { %p241_p10 = pnand %p239_p9, %p236_p8 }
  0x19   :  { %244 = shalt.err (!%p241_p10)
}
  0x1a   :  { %s245_s8 = scalar_lea.vmem %s29_s27, 512  ;;  %p250_p12 = scmp.lt.s32.totalorder %s29_s27, %s29_s27 }
  0x1b   :  { %p246_p11 = scmp.ne.s32.totalorder %s29_s27, %s245_s8  ;;  %p251_p13 = scmp.lt.s32.totalorder %s245_s8, %s245_s8 }
  0x1d   :  { %p252_p0 = por %p251_p13, %p250_p12 }
  0x1f   :  { %p253_p1 = pnand %p252_p0, %p246_p11 }
  0x21   :  { %256 = shalt.err (!%p253_p1)
}
  0x22   :  { %34 = dma.hbm_to_vmem [thread:$0]  %s366_s1, 512, %s29_s27, [#allocation7], %s286_s22, %s286_s22, %s287_s23  }
  0x23   :  { %279 = dma.done.wait [#allocation4], 256  }
  0x24   :  { %280 = vsyncadd [#allocation4], 4294967040 }
  0x25   :  { %281 = dma.done.wait [#allocation7], 512  }
  0x26   :  { %282 = vsyncadd [#allocation7], 4294966784  ;;  %vm47_vm0 = vcmask 785408   ;;  %v289_v0 = vmov 0.0   ;;  %vm58_vm1 = vcmask 261120   ;;  %v54_v1 = vld [vmem:[#allocation6] sm:$0xff] }
  0x27   :  { %49 = vst.msk [vmem:[#allocation2 + $0x8] sm:$0xff] %vm47_vm0, %v289_v0  ;;  %48 = vst.msk [vmem:[#allocation2] sm:$0xff] %vm47_vm0, %v289_v0  ;;  %v55_v2 = vld [vmem:[#allocation6 + $0x8] sm:$0xff]  ;;  %v56_v3 = vld [vmem:[#allocation6 + $0x10] sm:$0xff]  ;;  %s290_s11 = smov [#allocation8]  }
  0x28   :  { %v199_v4 = vpack.c.bf16 %v55_v2, %v54_v1  ;;  %v57_v5 = vld [vmem:[#allocation6 + $0x18] sm:$0xff]  ;;  %v52_v6 = vld [vmem:[#allocation3] sm:$0xff]  ;;  %v181_v15 = vld [vmem:[%s367_s2] ss:$0 sm:$0xff]  ;;  %s166_s12 = sshll.u32 %s290_s11, 4  ;;  %s167_s12 = int_to_ptr.vmem [resolvable:$true] %s166_s12 }
  0x29   :  { %v203_v7 = vpack.c.bf16 %v57_v5, %v56_v3  ;;  %196 = vmatprep.mubr.msk.f32.mxu0 %vm58_vm1, %v52_v6  ;;  %v53_v8 = vld [vmem:[#allocation3 + $0x8] sm:$0xff]  ;;  %s257_s13 = scalar_lea.vmem %s167_s12, 256  ;;  %p262_p3 = scmp.lt.s32.totalorder %s167_s12, %s167_s12 }
  0x2a   :  { %200 = vmatprep.subr.bf16.mxu0 %v199_v4  ;;  %p258_p2 = scmp.ne.s32.totalorder %s167_s12, %s257_s13  ;;  %p263_p4 = scmp.lt.s32.totalorder %s257_s13, %s257_s13 }
  0x2b   :  { %202 = vmatpush3.bf16.msra.mxu0 %v199_v4 }
  0x2c   :  { %204 = vmatprep.subr.bf16.mxu0 %v203_v7  ;;  %p264_p5 = por %p263_p4, %p262_p3 }
  0x2e   :  { %v51_v9 = vld [vmem:[#allocation2 + $0x8] sm:$0xff]  ;;  %v50_v10 = vld [vmem:[#allocation2] sm:$0xff]  ;;  %p265_p6 = pnand %p264_p5, %p258_p2 }
  0x2f   :  { %206 = vmatpush3.bf16.msra.mxu0 %v203_v7 }
  0x32   :  { %197 = vmatmul.mubr.msk.f32.vlgmr.msra.gmra.mrb[0].mxu0 %vm58_vm1, %v53_v8 }
 0x105   :  { %v198_v11 = vpop.f32.mrb[0].mxu0 }
 0x106   :  { %v141_v12 = vadd.f32 %v198_v11, %v51_v9  ;;  %v131_v13 = vpop.f32.mrb[1].mxu0 }
 0x107   :  { %v140_v14 = vadd.f32 %v131_v13, %v50_v10 }
 0x108   :  { %144 = vst.msk [vmem:[#allocation2 + $0x8] sm:$0xff] %vm47_vm0, %v141_v12 }
 0x109   :  { %143 = vst.msk [vmem:[#allocation2] sm:$0xff] %vm47_vm0, %v140_v14 }
 0x10f   :  { %v149_v16 = vld [vmem:[#allocation2 + $0x8] sm:$0xff] }
 0x110   :  { %v148_v17 = vld [vmem:[#allocation2] sm:$0xff]  ;;  %v158_v18 = vadd.f32 %v181_v15, %v149_v16 }
 0x111   :  { %v157_v19 = vadd.f32 %v181_v15, %v148_v17 }
 0x112   :  { %160 = vst.msk [vmem:[#allocation8 + $0x8] sm:$0xff] %vm47_vm0, %v158_v18 }
 0x113   :  { %159 = vst.msk [vmem:[#allocation8] sm:$0xff] %vm47_vm0, %v157_v19 }
 0x114   :  { %268 = shalt.err (!%p265_p6)
}
 0x115   :  { %s269_s15 = scalar_lea.hbm %s368_s3, 256 }
 0x116   :  { %p270_p7 = scmp.ne.s32.totalorder %s368_s3, %s269_s15  ;;  %p273_p8 = scmp.lt.u32.totalorder %s269_s15, %s368_s3 }
 0x118   :  { %p275_p9 = pnand %p273_p8, %p270_p7 }
 0x11a   :  { %278 = shalt.err (!%p275_p9)
}
 0x11b   :  { %172 = dma.vmem_to_hbm [thread:$0]  %s167_s12, 256, %s368_s3, [#allocation5], %s286_s22, %s286_s22, %s287_s23  }
 0x11c   :  { %283 = dma.done.wait [#allocation5], 256  }
 0x11d   :  { %284 = vsyncadd [#allocation5], 4294967040 }
 0x11e   :  { %176 = vsyncpa [#allocation4], 1 }
 0x11f   :  { %177 = vsyncpa [#allocation7], 1 }
 0x120   :  { %178 = vsyncpa [#allocation5], 1 }

</bundles_post_ra>
